<compile_context>
chip_gen: v7x
topology: tpu7x:2x2x1
jax: 0.10.0
libtpu: 0.0.40
codegen_flags: <defaults>
</compile_context>

<pallas_src>
import jax
import jax.numpy as jnp
from jax.experimental import pallas as pl
from jax.experimental.pallas import tpu as pltpu

EPS = 1e-5
_MIB = 1024 * 1024


# --------------------------------------------------------------------------- planning
def _vmem_capacity_bytes():
    try:
        return int(pltpu.get_tpu_info().vmem_capacity_bytes)
    except Exception:
        return 64 * _MIB  # conservative (v7x-sized) default


def _pick_tb(batch, cost_per_row, budget):
    """Largest multiple-of-8 divisor of `batch` whose block fits `budget` bytes."""
    if batch % 8 != 0:
        return batch
    cap = max(8, budget // max(cost_per_row, 1))
    cap = max(8, min((cap // 8) * 8, batch))
    for cand in range(cap, 7, -8):
        if batch % cand == 0:
            return cand
    return 8


def _plan(num_fields, batch, emb, in_itemsize, out_itemsize, force_two_pass):
    vmem_cap = _vmem_capacity_bytes()
    small_vmem = vmem_cap <= 96 * _MIB                 # v7x-class (64 MiB / TC)
    block_budget = (4 if small_vmem else 12) * _MIB    # (F, tB, tE) input block budget
    ceiling = (40 if small_vmem else 96) * _MIB        # scoped-VMEM ceiling we allow

    # E-tile candidates: lane-dense, divide E.  On v7x prefer >=2 tiles so the
    # "parallel" E axis actually feeds both TensorCores; further halvings are kept
    # as VMEM-fit fallbacks for the resident column.
    if emb % 128 == 0:
        t_e0 = emb // 2 if (small_vmem and emb % 256 == 0) else emb
        cand_te = [t_e0]
        t = t_e0
        while t % 256 == 0 and t > 128:
            t //= 2
            cand_te.append(t)
    else:
        cand_te = [emb]  # full-extent block is always legal

    def fused_need(t_b, t_e):
        in_block = num_fields * t_b * t_e * in_itemsize  # double-buffered input
        gb_block = 2 * t_e * 4                           # gamma/beta tile
        out_col = batch * t_e * out_itemsize             # resident output column
        col_scr = batch * t_e * 4                        # f32 cross column scratch
        welford = 2 * t_e * 4                            # running mean / M2
        temps = 4 * t_b * t_e * 4                        # s, sq, xf, cross live slabs
        return 2 * (in_block + gb_block) + 2 * out_col + col_scr + welford + temps + 2 * _MIB

    if not force_two_pass:
        for t_e in cand_te:
            t_b = _pick_tb(batch, num_fields * t_e * in_itemsize, block_budget)
            need = fused_need(t_b, t_e)
            if need <= ceiling:
                return dict(mode="fused", t_b=t_b, t_e=t_e,
                            vmem_limit=int(min(ceiling, max(need, 16 * _MIB))))

    # Two-pass fallback (resident column does not fit scoped VMEM, or forced).
    t_e = cand_te[-1]
    t_b = _pick_tb(batch, num_fields * t_e * in_itemsize, block_budget)
    # Pass-2 block carries no F factor -> it gets a much larger batch tile.
    t_b2 = _pick_tb(batch, t_e * (4 + out_itemsize), block_budget)
    p1_need = (2 * (num_fields * t_b * t_e * in_itemsize + t_b * t_e * 4 + 4 * t_e * 4)
               + 2 * t_e * 4 + 4 * t_b * t_e * 4 + 2 * _MIB)
    p2_need = 2 * (t_b2 * t_e * 4 + t_b2 * t_e * out_itemsize + 2 * t_e * 4) + 2 * _MIB
    return dict(mode="two_pass", t_b=t_b, t_e=t_e, t_b2=t_b2,
                vmem_limit=int(min(ceiling, max(p1_need, p2_need, 16 * _MIB))))


# --------------------------------------------------------------------------- in-kernel helpers
def _bi_interaction_f32(x_ref, num_fields):
    """cross = 0.5 * ((sum_f x)^2 - sum_f x^2) for one (F, tB, tE) block, in f32."""
    s0 = x_ref[0].astype(jnp.float32)
    if num_fields <= 16:
        s, sq = s0, s0 * s0
        for f in range(1, num_fields):
            xf = x_ref[f].astype(jnp.float32)
            s = s + xf
            sq = sq + xf * xf
    else:
        # Bound live ranges at DLRM-scale field counts; the kernel stays HBM-bound.
        def body(f, carry):
            s, sq = carry
            xf = x_ref[f].astype(jnp.float32)
            return s + xf, sq + xf * xf
        s, sq = jax.lax.fori_loop(1, num_fields, body, (s0, s0 * s0))
    return 0.5 * (s * s - sq)


def _welford_merge(b, t_b, cross, mean_sc, m2_sc):
    """Chan/Welford parallel merge of per-batch-tile column statistics (stable)."""
    tile_mean = jnp.mean(cross, axis=0, keepdims=True)                       # (1, tE)
    tile_m2 = jnp.sum(jnp.square(cross - tile_mean), axis=0, keepdims=True)  # (1, tE)
    t_b_f = float(t_b)

    @pl.when(b == 0)
    def _init():
        mean_sc[...] = tile_mean
        m2_sc[...] = tile_m2

    @pl.when(b > 0)
    def _merge():
        n_a = (b * t_b).astype(jnp.float32)
        n_new = n_a + t_b_f
        delta = tile_mean - mean_sc[...]
        mean_sc[...] = mean_sc[...] + delta * (t_b_f / n_new)
        m2_sc[...] = m2_sc[...] + tile_m2 + (delta * delta) * (n_a * t_b_f / n_new)


def _fold_affine(gb_ref, mean_sc, m2_sc, inv_count, eps):
    """Fold BN affine into per-column (scale, shift)."""
    var = m2_sc[...] * inv_count                 # biased variance
    inv = jax.lax.rsqrt(var + eps)               # EUP slot
    gb = gb_ref[...]
    scale = gb[0:1, :] * inv
    shift = gb[1:2, :] - mean_sc[...] * scale
    return scale, shift


# --------------------------------------------------------------------------- kernels
def _build_fused_kernel(num_fields, batch_total, t_b, n_b_tiles, eps):
    """Fused: pooling + streaming BN stats + normalization, one HBM write per column."""
    inv_count = 1.0 / float(batch_total)

    def kernel(x_ref, gb_ref, o_ref, col_sc, mean_sc, m2_sc):
        # x_ref: (F, tB, tE)   gb_ref: (2, tE) [gamma; beta]
        # o_ref: (B, tE) resident output column (written once, at the last b tile)
        # col_sc: (B, tE) f32 cross column   mean_sc/m2_sc: (1, tE) f32
        b = pl.program_id(1)

        cross = _bi_interaction_f32(x_ref, num_fields)
        row0 = pl.multiple_of(b * t_b, t_b)
        col_sc[pl.ds(row0, t_b), :] = cross
        _welford_merge(b, t_b, cross, mean_sc, m2_sc)

        # Output block index is constant across b, so o_ref stays resident and is
        # flushed to HBM only when the E-tile changes (after this write).
        @pl.when(b == n_b_tiles - 1)
        def _finalize():
            scale, shift = _fold_affine(gb_ref, mean_sc, m2_sc, inv_count, eps)
            o_ref[...] = (col_sc[...] * scale + shift).astype(o_ref.dtype)

    return kernel


def _build_stats_kernel(num_fields, batch_total, t_b, n_b_tiles, eps):
    """Two-pass fallback, pass 1: pooling + streaming BN stats -> (cross, scale/shift)."""
    inv_count = 1.0 / float(batch_total)

    def kernel(x_ref, gb_ref, cross_ref, ss_ref, mean_sc, m2_sc):
        b = pl.program_id(1)

        # Defensive init so a future pipelining change can never flush garbage.
        @pl.when(b == 0)
        def _zero():
            ss_ref[...] = jnp.zeros_like(ss_ref)

        cross = _bi_interaction_f32(x_ref, num_fields)
        cross_ref[...] = cross.astype(cross_ref.dtype)
        _welford_merge(b, t_b, cross, mean_sc, m2_sc)

        @pl.when(b == n_b_tiles - 1)
        def _finalize():
            scale, shift = _fold_affine(gb_ref, mean_sc, m2_sc, inv_count, eps)
            ss_ref[0:1, :] = scale
            ss_ref[1:2, :] = shift

    return kernel


def _normalize_kernel(cross_ref, ss_ref, o_ref):
    """Two-pass fallback, pass 2: y = cross * scale + shift (lane-dense FMA)."""
    ss = ss_ref[...]
    o_ref[...] = (cross_ref[...].astype(jnp.float32) * ss[0:1, :]
                  + ss[1:2, :]).astype(o_ref.dtype)


# --------------------------------------------------------------------------- wrapper
def feature_interaction(emb_stk, gamma, beta, *, force_two_pass=False,
                        two_pass_cross_bf16=False):
    """emb_stk: (F, B, E) (f32 or bf16); gamma, beta: (E,). Returns (B, E) in emb dtype."""
    F, B, E = emb_stk.shape
    out_dtype = emb_stk.dtype
    in_itemsize = jnp.dtype(emb_stk.dtype).itemsize
    out_itemsize = jnp.dtype(out_dtype).itemsize

    plan = _plan(F, B, E, in_itemsize, out_itemsize, force_two_pass)
    t_b, t_e = plan["t_b"], plan["t_e"]
    n_e_tiles, n_b_tiles = E // t_e, B // t_b
    vmem_limit = plan["vmem_limit"]

    # Merge the two 1xE params into one (2, E) input -> one small DMA per tile.
    gb = jnp.stack([gamma.astype(jnp.float32), beta.astype(jnp.float32)], axis=0)

    if plan["mode"] == "fused":
        kernel = _build_fused_kernel(F, B, t_b, n_b_tiles, EPS)
        return pl.pallas_call(
            kernel,
            out_shape=jax.ShapeDtypeStruct((B, E), out_dtype),
            grid_spec=pltpu.PrefetchScalarGridSpec(
                num_scalar_prefetch=0,
                grid=(n_e_tiles, n_b_tiles),
                in_specs=[
                    pl.BlockSpec((F, t_b, t_e), lambda e, b: (0, b, e)),
                    pl.BlockSpec((2, t_e), lambda e, b: (0, e)),
                ],
                # Full-B column, constant across b -> resident in VMEM across the
                # reduction axis, written back to HBM exactly once per E tile.
                out_specs=pl.BlockSpec((B, t_e), lambda e, b: (0, e)),
                scratch_shapes=[
                    pltpu.VMEM((B, t_e), jnp.float32),   # resident f32 cross column
                    pltpu.VMEM((1, t_e), jnp.float32),   # running mean
                    pltpu.VMEM((1, t_e), jnp.float32),   # running M2
                ],
            ),
            compiler_params=pltpu.CompilerParams(
                dimension_semantics=("parallel", "arbitrary"),
                vmem_limit_bytes=vmem_limit,
            ),
            cost_estimate=pl.CostEstimate(
                flops=int((3 * F + 8) * B * E),
                transcendentals=int(E),
                bytes_accessed=int(F * B * E * in_itemsize
                                   + B * E * out_itemsize + 2 * E * 4),
            ),
        )(emb_stk, gb)

    # ---------------- two-pass fallback (resident column does not fit) ----------
    t_b2 = plan["t_b2"]
    cross_dtype = (jnp.bfloat16
                   if (two_pass_cross_bf16 and out_dtype == jnp.bfloat16)
                   else jnp.float32)

    stats_kernel = _build_stats_kernel(F, B, t_b, n_b_tiles, EPS)
    cross, scale_shift = pl.pallas_call(
        stats_kernel,
        out_shape=(
            jax.ShapeDtypeStruct((B, E), cross_dtype),
            jax.ShapeDtypeStruct((2, E), jnp.float32),
        ),
        grid_spec=pltpu.PrefetchScalarGridSpec(
            num_scalar_prefetch=0,
            grid=(n_e_tiles, n_b_tiles),
            in_specs=[
                pl.BlockSpec((F, t_b, t_e), lambda e, b: (0, b, e)),
                pl.BlockSpec((2, t_e), lambda e, b: (0, e)),
            ],
            out_specs=[
                pl.BlockSpec((t_b, t_e), lambda e, b: (b, e)),
                pl.BlockSpec((2, t_e), lambda e, b: (0, e)),
            ],
            scratch_shapes=[
                pltpu.VMEM((1, t_e), jnp.float32),
                pltpu.VMEM((1, t_e), jnp.float32),
            ],
        ),
        compiler_params=pltpu.CompilerParams(
            dimension_semantics=("parallel", "arbitrary"),
            vmem_limit_bytes=vmem_limit,
        ),
        cost_estimate=pl.CostEstimate(
            flops=int((3 * F + 8) * B * E),
            transcendentals=int(E),
            bytes_accessed=int(F * B * E * in_itemsize
                               + B * E * jnp.dtype(cross_dtype).itemsize + 4 * E * 4),
        ),
    )(emb_stk, gb)

    out = pl.pallas_call(
        _normalize_kernel,
        out_shape=jax.ShapeDtypeStruct((B, E), out_dtype),
        grid_spec=pltpu.PrefetchScalarGridSpec(
            num_scalar_prefetch=0,
            grid=(n_e_tiles, B // t_b2),
            in_specs=[
                pl.BlockSpec((t_b2, t_e), lambda e, b: (b, e)),
                pl.BlockSpec((2, t_e), lambda e, b: (0, e)),
            ],
            out_specs=pl.BlockSpec((t_b2, t_e), lambda e, b: (b, e)),
        ),
        compiler_params=pltpu.CompilerParams(
            dimension_semantics=("parallel", "parallel"),
            vmem_limit_bytes=vmem_limit,
        ),
        cost_estimate=pl.CostEstimate(
            flops=int(2 * B * E),
            transcendentals=0,
            bytes_accessed=int(B * E * (jnp.dtype(cross_dtype).itemsize + out_itemsize)
                               + 2 * E * 4),
        ),
    )(cross, scale_shift)
    return out


# --------------------------------------------------------------------------- reference
def feature_interaction_ref(emb_stk, gamma, beta):
    # Pure-JAX reference mirroring the PyTorch forward (training-mode BN).
    x = jnp.transpose(emb_stk, (1, 0, 2)).astype(jnp.float32)  # (B, F, E)
    cross = 0.5 * (jnp.square(jnp.sum(x, axis=1)) - jnp.sum(jnp.square(x), axis=1))
    mean = jnp.mean(cross, axis=0, keepdims=True)
    var = jnp.mean(jnp.square(cross - mean), axis=0, keepdims=True)
    return (cross - mean) * jax.lax.rsqrt(var + EPS) * gamma[None, :] + beta[None, :]


if __name__ == "__main__":
    # Small shapes consistent with the module: num_fields=4, batch=64, emb_size=256.
    NUM_FIELDS, BATCH, EMB = 4, 64, 256

    key = jax.random.PRNGKey(0)
    kx, kg, kb = jax.random.split(key, 3)
    emb_stk = jax.random.normal(kx, (NUM_FIELDS, BATCH, EMB), dtype=jnp.float32)

    # BatchNorm1d(emb_size) affine params (perturbed to exercise the affine path).
    gamma = 1.0 + 0.1 * jax.random.normal(kg, (EMB,), dtype=jnp.float32)
    beta = 0.1 * jax.random.normal(kb, (EMB,), dtype=jnp.float32)

    ref = feature_interaction_ref(emb_stk, gamma, beta)

    # Fused single-pass path (default), f32 embeddings.
    out = jax.block_until_ready(feature_interaction(emb_stk, gamma, beta))
    assert out.shape == (BATCH, EMB)
    assert jnp.allclose(out, ref, atol=1e-4, rtol=1e-4), "fused f32 mismatch vs reference"

    # bf16-streamed embeddings (recommended deployment dtype), fused path.
    emb_bf16 = emb_stk.astype(jnp.bfloat16)
    ref_bf16 = feature_interaction_ref(emb_bf16.astype(jnp.float32), gamma, beta)
    out_bf16 = jax.block_until_ready(feature_interaction(emb_bf16, gamma, beta))
    assert out_bf16.shape == (BATCH, EMB)
    assert jnp.allclose(out_bf16.astype(jnp.float32), ref_bf16, atol=5e-2, rtol=5e-2), (
        "fused bf16 mismatch vs reference"
    )

    # Two-pass fallback path (exercised explicitly so the huge-B branch is tested).
    out_tp = jax.block_until_ready(
        feature_interaction(emb_stk, gamma, beta, force_two_pass=True))
    assert jnp.allclose(out_tp, ref, atol=1e-4, rtol=1e-4), "two-pass f32 mismatch"

    print("KERNEL_OK")
</pallas_src>

<mosaic_0001>
module attributes {stable_mosaic.version = 11 : i64} {
  func.func @kernel(%arg0: i32, %arg1: i32, %arg2: memref<4x64x128xf32, #tpu.memory_space<vmem>>, %arg3: memref<2x128xf32, #tpu.memory_space<vmem>>, %arg4: memref<64x128xf32, #tpu.memory_space<vmem>>, %arg5: memref<64x128xf32, #tpu.memory_space<vmem>>, %arg6: memref<1x128xf32, #tpu.memory_space<vmem>>, %arg7: memref<1x128xf32, #tpu.memory_space<vmem>>) attributes {dimension_semantics = [#tpu.dimension_semantics<parallel>, #tpu.dimension_semantics<arbitrary>], iteration_bounds = array<i64: 2, 1>, scalar_prefetch = 0 : i64, scratch_operands = 3 : i64, tpu.core_type = #tpu.core_type<tc>, window_params = [{transform_indices = @transform_0, window_bounds = array<i64: 4, 64, 128>}, {transform_indices = @transform_1, window_bounds = array<i64: 2, 128>}, {transform_indices = @transform_2, window_bounds = array<i64: 64, 128>}]} {
    %c0 = arith.constant 0 : index
    %c0_0 = arith.constant 0 : index
    %c0_1 = arith.constant 0 : index
    %0 = vector.load %arg2[%c0, %c0_0, %c0_1] : memref<4x64x128xf32, #tpu.memory_space<vmem>>, vector<1x64x128xf32>
    %1 = vector.shape_cast %0 : vector<1x64x128xf32> to vector<64x128xf32>
    %2 = arith.mulf %1, %1 : vector<64x128xf32>
    %c1 = arith.constant 1 : index
    %c0_2 = arith.constant 0 : index
    %c0_3 = arith.constant 0 : index
    %3 = vector.load %arg2[%c1, %c0_2, %c0_3] : memref<4x64x128xf32, #tpu.memory_space<vmem>>, vector<1x64x128xf32>
    %4 = vector.shape_cast %3 : vector<1x64x128xf32> to vector<64x128xf32>
    %5 = arith.addf %1, %4 : vector<64x128xf32>
    %6 = arith.mulf %4, %4 : vector<64x128xf32>
    %7 = arith.addf %2, %6 : vector<64x128xf32>
    %c2 = arith.constant 2 : index
    %c0_4 = arith.constant 0 : index
    %c0_5 = arith.constant 0 : index
    %8 = vector.load %arg2[%c2, %c0_4, %c0_5] : memref<4x64x128xf32, #tpu.memory_space<vmem>>, vector<1x64x128xf32>
    %9 = vector.shape_cast %8 : vector<1x64x128xf32> to vector<64x128xf32>
    %10 = arith.addf %5, %9 : vector<64x128xf32>
    %11 = arith.mulf %9, %9 : vector<64x128xf32>
    %12 = arith.addf %7, %11 : vector<64x128xf32>
    %c3 = arith.constant 3 : index
    %c0_6 = arith.constant 0 : index
    %c0_7 = arith.constant 0 : index
    %13 = vector.load %arg2[%c3, %c0_6, %c0_7] : memref<4x64x128xf32, #tpu.memory_space<vmem>>, vector<1x64x128xf32>
    %14 = vector.shape_cast %13 : vector<1x64x128xf32> to vector<64x128xf32>
    %15 = arith.addf %10, %14 : vector<64x128xf32>
    %16 = arith.mulf %14, %14 : vector<64x128xf32>
    %17 = arith.addf %12, %16 : vector<64x128xf32>
    %18 = arith.mulf %15, %15 : vector<64x128xf32>
    %19 = arith.subf %18, %17 : vector<64x128xf32>
    %cst = arith.constant 5.000000e-01 : f32
    %20 = vector.broadcast %cst : f32 to vector<64x128xf32>
    %21 = arith.mulf %20, %19 : vector<64x128xf32>
    %c64_i32 = arith.constant 64 : i32
    %22 = arith.muli %arg1, %c64_i32 : i32
    %23 = tpu.assume_multiple %22, 64 : i32
    %24 = arith.index_cast %23 : i32 to index
    %c0_8 = arith.constant 0 : index
    %25 = vector.load %arg5[%24, %c0_8] : memref<64x128xf32, #tpu.memory_space<vmem>>, vector<64x128xf32>
    tpu.vector_store %arg5[%24, %c0_8], %21 {strides = array<i32>} : memref<64x128xf32, #tpu.memory_space<vmem>>, vector<64x128xf32>,
    %cst_9 = arith.constant dense<0.000000e+00> : vector<128xf32>
    %26 = vector.multi_reduction <add>, %21, %cst_9 [0] : vector<64x128xf32> to vector<128xf32>
    %27 = vector.shape_cast %26 : vector<128xf32> to vector<1x128xf32>
    %cst_10 = arith.constant 6.400000e+01 : f32
    %28 = vector.broadcast %cst_10 : f32 to vector<1x128xf32>
    %29 = arith.divf %27, %28 : vector<1x128xf32>
    %30 = vector.broadcast %29 : vector<1x128xf32> to vector<64x128xf32>
    %31 = arith.subf %21, %30 : vector<64x128xf32>
    %32 = arith.mulf %31, %31 : vector<64x128xf32>
    %cst_11 = arith.constant dense<0.000000e+00> : vector<128xf32>
    %33 = vector.multi_reduction <add>, %32, %cst_11 [0] : vector<64x128xf32> to vector<128xf32>
    %34 = vector.shape_cast %33 : vector<128xf32> to vector<1x128xf32>
    %c0_i32 = arith.constant 0 : i32
    %35 = arith.cmpi eq, %arg1, %c0_i32 : i32
    %36 = arith.extui %35 : i1 to i32
    %c0_i32_12 = arith.constant 0 : i32
    %37 = arith.cmpi ne, %36, %c0_i32_12 : i32
    scf.if %37 {
      %c0_17 = arith.constant 0 : index
      %c0_18 = arith.constant 0 : index
      %44 = vector.load %arg6[%c0_17, %c0_18] : memref<1x128xf32, #tpu.memory_space<vmem>>, vector<1x128xf32>
      tpu.vector_store %arg6[%c0_17, %c0_18], %29 {strides = array<i32>} : memref<1x128xf32, #tpu.memory_space<vmem>>, vector<1x128xf32>,
      %c0_19 = arith.constant 0 : index
      %c0_20 = arith.constant 0 : index
      %45 = vector.load %arg7[%c0_19, %c0_20] : memref<1x128xf32, #tpu.memory_space<vmem>>, vector<1x128xf32>
      tpu.vector_store %arg7[%c0_19, %c0_20], %34 {strides = array<i32>} : memref<1x128xf32, #tpu.memory_space<vmem>>, vector<1x128xf32>,
    } else {
    }
    %c0_i32_13 = arith.constant 0 : i32
    %38 = arith.cmpi sgt, %arg1, %c0_i32_13 : i32
    %39 = arith.extui %38 : i1 to i32
    %c0_i32_14 = arith.constant 0 : i32
    %40 = arith.cmpi ne, %39, %c0_i32_14 : i32
    scf.if %40 {
      %c64_i32_17 = arith.constant 64 : i32
      %44 = arith.muli %arg1, %c64_i32_17 : i32
      %45 = arith.sitofp %44 : i32 to f32
      %cst_18 = arith.constant 6.400000e+01 : f32
      %46 = arith.addf %45, %cst_18 : f32
      %c0_19 = arith.constant 0 : index
      %c0_20 = arith.constant 0 : index
      %47 = vector.load %arg6[%c0_19, %c0_20] : memref<1x128xf32, #tpu.memory_space<vmem>>, vector<1x128xf32>
      %48 = arith.subf %29, %47 : vector<1x128xf32>
      %c0_21 = arith.constant 0 : index
      %c0_22 = arith.constant 0 : index
      %49 = vector.load %arg6[%c0_21, %c0_22] : memref<1x128xf32, #tpu.memory_space<vmem>>, vector<1x128xf32>
      %cst_23 = arith.constant 6.400000e+01 : f32
      %50 = arith.divf %cst_23, %46 : f32
      %51 = vector.broadcast %50 : f32 to vector<1x128xf32>
      %52 = arith.mulf %48, %51 : vector<1x128xf32>
      %53 = arith.addf %49, %52 : vector<1x128xf32>
      %c0_24 = arith.constant 0 : index
      %c0_25 = arith.constant 0 : index
      %54 = vector.load %arg6[%c0_24, %c0_25] : memref<1x128xf32, #tpu.memory_space<vmem>>, vector<1x128xf32>
      tpu.vector_store %arg6[%c0_24, %c0_25], %53 {strides = array<i32>} : memref<1x128xf32, #tpu.memory_space<vmem>>, vector<1x128xf32>,
      %c0_26 = arith.constant 0 : index
      %c0_27 = arith.constant 0 : index
      %55 = vector.load %arg7[%c0_26, %c0_27] : memref<1x128xf32, #tpu.memory_space<vmem>>, vector<1x128xf32>
      %56 = arith.addf %55, %34 : vector<1x128xf32>
      %57 = arith.mulf %48, %48 : vector<1x128xf32>
      %cst_28 = arith.constant 6.400000e+01 : f32
      %58 = arith.mulf %45, %cst_28 : f32
      %59 = arith.divf %58, %46 : f32
      %60 = vector.broadcast %59 : f32 to vector<1x128xf32>
      %61 = arith.mulf %57, %60 : vector<1x128xf32>
      %62 = arith.addf %56, %61 : vector<1x128xf32>
      %c0_29 = arith.constant 0 : index
      %c0_30 = arith.constant 0 : index
      %63 = vector.load %arg7[%c0_29, %c0_30] : memref<1x128xf32, #tpu.memory_space<vmem>>, vector<1x128xf32>
      tpu.vector_store %arg7[%c0_29, %c0_30], %62 {strides = array<i32>} : memref<1x128xf32, #tpu.memory_space<vmem>>, vector<1x128xf32>,
    } else {
    }
    %c0_i32_15 = arith.constant 0 : i32
    %41 = arith.cmpi eq, %arg1, %c0_i32_15 : i32
    %42 = arith.extui %41 : i1 to i32
    %c0_i32_16 = arith.constant 0 : i32
    %43 = arith.cmpi ne, %42, %c0_i32_16 : i32
    scf.if %43 {
      %c0_17 = arith.constant 0 : index
      %c0_18 = arith.constant 0 : index
      %44 = vector.load %arg7[%c0_17, %c0_18] : memref<1x128xf32, #tpu.memory_space<vmem>>, vector<1x128xf32>
      %cst_19 = arith.constant 1.562500e-02 : f32
      %45 = vector.broadcast %cst_19 : f32 to vector<1x128xf32>
      %46 = arith.mulf %44, %45 : vector<1x128xf32>
      %cst_20 = arith.constant 9.99999974E-6 : f32
      %47 = vector.broadcast %cst_20 : f32 to vector<1x128xf32>
      %48 = arith.addf %46, %47 : vector<1x128xf32>
      %49 = math.rsqrt %48 : vector<1x128xf32>
      %c0_21 = arith.constant 0 : index
      %c0_22 = arith.constant 0 : index
      %50 = vector.load %arg3[%c0_21, %c0_22] : memref<2x128xf32, #tpu.memory_space<vmem>>, vector<2x128xf32>
      %51 = vector.extract_strided_slice %50 {offsets = [0, 0], sizes = [1, 128], strides = [1, 1]} : vector<2x128xf32> to vector<1x128xf32>
      %52 = arith.mulf %51, %49 : vector<1x128xf32>
      %53 = vector.extract_strided_slice %50 {offsets = [1, 0], sizes = [1, 128], strides = [1, 1]} : vector<2x128xf32> to vector<1x128xf32>
      %c0_23 = arith.constant 0 : index
      %c0_24 = arith.constant 0 : index
      %54 = vector.load %arg6[%c0_23, %c0_24] : memref<1x128xf32, #tpu.memory_space<vmem>>, vector<1x128xf32>
      %55 = arith.mulf %54, %52 : vector<1x128xf32>
      %56 = arith.subf %53, %55 : vector<1x128xf32>
      %c0_25 = arith.constant 0 : index
      %c0_26 = arith.constant 0 : index
      %57 = vector.load %arg5[%c0_25, %c0_26] : memref<64x128xf32, #tpu.memory_space<vmem>>, vector<64x128xf32>
      %58 = vector.broadcast %52 : vector<1x128xf32> to vector<64x128xf32>
      %59 = arith.mulf %57, %58 : vector<64x128xf32>
      %60 = vector.broadcast %56 : vector<1x128xf32> to vector<64x128xf32>
      %61 = arith.addf %59, %60 : vector<64x128xf32>
      %c0_27 = arith.constant 0 : index
      %c0_28 = arith.constant 0 : index
      %62 = vector.load %arg4[%c0_27, %c0_28] : memref<64x128xf32, #tpu.memory_space<vmem>>, vector<64x128xf32>
      tpu.vector_store %arg4[%c0_27, %c0_28], %61 {strides = array<i32>} : memref<64x128xf32, #tpu.memory_space<vmem>>, vector<64x128xf32>,
    } else {
    }
    return
  }
  func.func @transform_0(%arg0: i32, %arg1: i32) -> (i32, i32, i32) {
    %c0_i32 = arith.constant 0 : i32
    %c0_i32_0 = arith.constant 0 : i32
    return %c0_i32, %arg1, %arg0 : i32, i32, i32
  }
  func.func @transform_1(%arg0: i32, %arg1: i32) -> (i32, i32) {
    %c0_i32 = arith.constant 0 : i32
    %c0_i32_0 = arith.constant 0 : i32
    return %c0_i32, %arg0 : i32, i32
  }
  func.func @transform_2(%arg0: i32, %arg1: i32) -> (i32, i32) {
    %c0_i32 = arith.constant 0 : i32
    %c0_i32_0 = arith.constant 0 : i32
    return %c0_i32, %arg0 : i32, i32
  }
}

</mosaic_0001>

<bundles_post_ra>
// kernel: tpu_custom_call.1
= control target key start
LH: loop header
LB: loop body
LE: loop exit
PB: predicated region body
PF: predicated region fallthrough
CT: control target
= control target key end

     0   :  { %7 = vsyncpa [#allocation6], 0  ;;  %s1202_s0 = inlined_call_operand.hbm [shape: f32[4,64,256], index: 0, kind: input, shape index: {}]   ;;  %s1203_s1 = inlined_call_operand.hbm [shape: f32[2,256], index: 1, kind: input, shape index: {}]   ;;  %s1204_s2 = inlined_call_operand.hbm [shape: f32[64,256], index: 2, kind: output, shape index: {}]  }
   0x1   :  { %9 = vsyncpa [#allocation6 + $0x1], 0 }
   0x2   :  { %10 = vsyncpa [#allocation9], 0 }
   0x3   :  { %12 = vsyncpa [#allocation9 + $0x1], 0 }
   0x4   :  { %13 = vsyncpa [#allocation7], 0 }
   0x5   :  { %15 = vsyncpa [#allocation7 + $0x1], 0  ;;  %s909_s9 = smov 0   ;;  %s911_s10 = smov 0  }
   0x6   :  { %s913_s11 = smov 0   ;;  %s915_s12 = smov 0  }
   0x7   :  { %s917_s13 = smov 0   ;;  %s919_s14 = smov 0  }
   0x8 LB: > { %s622_s15 = sadd.s32 4294967295, %s883_s14   ;;  %s623_s16 = sadd.s32 4294967294, %s883_s14   ;;  %s883_s14 = sphi %s919_s14, %s21_s14   ;;  %s879_s13 = sphi %s917_s13, %s1222_s13   ;;  %s875_s12 = sphi %s915_s12, %s1221_s12   ;;  %s871_s11 = sphi %s913_s11, %s1220_s11   ;;  %s867_s10 = sphi %s911_s10, %s1219_s10   ;;  %s863_s9 = sphi %s909_s9, %s1218_s9  }
   0x9   : > { %s33_s17 = sadd.s32 1, %s879_s13  ;;  %s42_s18 = sadd.s32 1, %s871_s11 }
   0xa   : > { %p35_p0 = scmp.ge.s32.totalorder %s33_s17, 2  ;;  %p49_p1 = scmp.ne.s32.totalorder %s871_s11, %s867_s10 }
   0xb   : > { %p50_p2 = scmp.eq.s32.totalorder %s883_s14, 0  ;;  %p55_p3 = scmp.ne.s32.totalorder %s867_s10, %s863_s9 }
   0xc   : > { %s1224_s17 = smov (%p35_p0, %s33_s17), 0  ;;  %p56_p5 = scmp.eq.s32.totalorder %s622_s15, 0 }
   0xd   : > { %p950_p4 = por %p50_p2, %p49_p1  ;;  %s38_s20 = ssub.s32 %s879_s13, %s1224_s17 }
   0xe   : > { %p105_p6 = scmp.eq.s32.totalorder %s622_s15, 1  ;;  %p40_p7 = scmp.eq.s32.totalorder %s38_s20, 0 }
   0xf   : > { %p956_p8 = por %p56_p5, %p55_p3  ;;  %p111_p10 = scmp.eq.s32.totalorder %s623_s16, 1 }
  0x10   : > { %p960_p9 = por %p105_p6, %p49_p1  ;;  %p679_p13 = scmp.lt.s32.totalorder %s883_s14, 2 }
  0x11   : > { %s1208_s21 = scalar_select %p956_p8, 1, 0 }
  0x12   : > { %s1209_s22 = scalar_select %p960_p9, 1, 0 }
  0x13   : > { %s965_s23 = scalar_select %p40_p7, %s871_s11, %s42_s18  }
  0x14   : > { %p967_p11 = por %p111_p10, %p55_p3  ;;  %s974_s25 = sand.u32 1, %s871_s11  }
  0x15   : > { %s626_s26 = sshll.u32 %s974_s25, 8  ;;  %s627_s27 = sshll.u32 %s879_s13, 7 }
  0x16   : > { %s1210_s24 = scalar_select %p967_p11, 1, 0 }
  0x17   : > { %s981_s30 = scalar_lea.hbm %s1202_s0, %s627_s27  ;;  %s135_s3 = scalar_lea.vmem [#allocation5], %s626_s26 }
  0x18   : > { %s144_s4 = sshll.u32 %s135_s3, 4  ;;  %p987_p0 = pnand %p679_p13, %p950_p4  ;;  %s983_s4 = int_to_ptr.vmem [resolvable:$true] %s144_s4 }
  0x19   : > { %s132_s6 = scalar_lea.sflag [#allocation6], %s974_s25  ;;  %s737_s7 = scalar_lea.hbm %s981_s30, 4096 }
  0x1a   : > { %p738_p1 = scmp.ne.s32.totalorder %s981_s30, %s737_s7  ;;  %p739_p2 = pneg %p987_p0 }
  0x1b   : > { %s742_s16 = scalar_lea.hbm %s1202_s0, 8192  ;;  %p743_p4 = scmp.lt.u32.totalorder %s981_s30, %s1202_s0 }
  0x1c   : > { %p740_p3 = pnand %p739_p2, %p738_p1  ;;  %p744_p6 = scmp.lt.u32.totalorder %s742_s16, %s737_s7 }
  0x1d   : > { %p746_p10 = scmp.lt.u32.totalorder %s737_s7, %s981_s30 }
  0x1e   : > { %p741_p5 = pneg %p740_p3  ;;  %p745_p7 = por %p744_p6, %p743_p4 }
  0x20   : > { %p747_p13 = por %p746_p10, %p745_p7 }
  0x22   : > { %p748_p12 = pnand %p747_p13, %p741_p5 }
  0x24   : > { %751 = shalt.err (!%p748_p12)
}
  0x25   : > { %s752_s20 = scalar_lea.vmem %s983_s4, 4096  ;;  %s885_s26 = smov [#allocation5]  }
  0x26   : > { %p753_p1 = scmp.ne.s32.totalorder %s983_s4, %s752_s20  ;;  %s757_s27 = sshll.u32 %s885_s26, 4  ;;  %s758_s27 = int_to_ptr.vmem [resolvable:$false] %s757_s27 }
  0x27   : > { %s759_s28 = scalar_lea.vmem %s758_s27, 8192  ;;  %p760_p9 = scmp.lt.s32.totalorder %s983_s4, %s758_s27 }
  0x28   : > { %p755_p3 = pnand %p753_p1, %p739_p2  ;;  %p761_p4 = scmp.lt.s32.totalorder %s759_s28, %s752_s20 }
  0x2a   : > { %p756_p11 = pneg %p755_p3  ;;  %p762_p6 = por %p761_p4, %p760_p9 }
  0x2c   : > { %p763_p7 = pnand %p762_p6, %p756_p11 }
  0x2e   : > { %766 = shalt.err (!%p763_p7)
}
  0x2f   : > { %s886_s29 = smov 256   ;;  %s887_s3 = smov 128  }
  0x30   : > { %s888_s7 = smov 8   ;;  %p630_p12 = scmp.ge.s32.totalorder %s883_s14, 1 }
  0x31   : > { %671 = dma.hbm_to_vmem [thread:$0]  (!%p987_p0), %s981_s30, 4096, %s983_s4, %s132_s6, %s886_s29, %s887_s3, %s888_s7  }
  0x32   : > { %p170_p9 = scmp.lt.s32.totalorder %s883_s14, 3  ;;  %s628_s8 = sshll.u32 %s974_s25, 1 }
  0x33   : > { %s629_s16 = sshll.u32 %s879_s13, 5  ;;  %s158_s18 = scalar_lea.vmem [#allocation8], %s628_s8 }
  0x34   : > { %p1022_p11 = pnand %p630_p12, %p170_p9  ;;  %s165_s19 = sshll.u32 %s158_s18, 4  ;;  %s166_s19 = int_to_ptr.vmem [resolvable:$true] %s165_s19 }
  0x35   : > { %s1030_s27 = scalar_lea.hbm %s1203_s1, %s629_s16  ;;  %s155_s30 = scalar_lea.sflag [#allocation9], %s974_s25 }
  0x36   : > { %s1212_s15 = scalar_select %p1022_p11, 1, 0 }
  0x37   : > { %s767_s4 = scalar_lea.hbm %s1030_s27, 32  ;;  %s772_s29 = scalar_lea.hbm %s1203_s1, 64 }
  0x38   : > { %p768_p5 = scmp.ne.s32.totalorder %s1030_s27, %s767_s4  ;;  %p773_p1 = scmp.lt.u32.totalorder %s1030_s27, %s1203_s1 }
  0x39   : > { %p774_p3 = scmp.lt.u32.totalorder %s772_s29, %s767_s4  ;;  %p776_p6 = scmp.lt.u32.totalorder %s767_s4, %s1030_s27 }
  0x3a   : > { %p770_p10 = pnand %p768_p5, %p739_p2 }
  0x3b   : > { %p775_p4 = por %p774_p3, %p773_p1 }
  0x3c   : > { %p771_p13 = pneg %p770_p10 }
  0x3d   : > { %p777_p7 = por %p776_p6, %p775_p4 }
  0x3f   : > { %p778_p12 = pnand %p777_p7, %p771_p13 }
  0x41   : > { %781 = shalt.err (!%p778_p12)
}
  0x42   : > { %s782_s25 = scalar_lea.vmem %s166_s19, 32  ;;  %s889_s8 = smov [#allocation8]  }
  0x43   : > { %p783_p9 = scmp.ne.s32.totalorder %s166_s19, %s782_s25  ;;  %s787_s16 = sshll.u32 %s889_s8, 4  ;;  %s788_s16 = int_to_ptr.vmem [resolvable:$false] %s787_s16 }
  0x44   : > { %s789_s18 = scalar_lea.vmem %s788_s16, 64  ;;  %p790_p8 = scmp.lt.s32.totalorder %s166_s19, %s788_s16 }
  0x45   : > { %p785_p5 = pnand %p783_p9, %p739_p2  ;;  %p791_p11 = scmp.lt.s32.totalorder %s789_s18, %s782_s25 }
  0x47   : > { %p786_p10 = pneg %p785_p5  ;;  %p792_p1 = por %p791_p11, %p790_p8 }
  0x49   : > { %p793_p3 = pnand %p792_p1, %p786_p10 }
  0x4b   : > { %796 = shalt.err (!%p793_p3)
}
  0x4c   : > { %674 = dma.hbm_to_vmem [thread:$0]  (!%p987_p0), %s1030_s27, 32, %s166_s19, %s155_s30  }
  0x4d   : > { %p1213_p13 = scmp.ne.s32.totalorder %s1212_s15, 0 }
  0x4e   : > { %s1055_s20 = sand.u32 (!%p1213_p13), 1, %s867_s10   ;;  %p1214_p8 = scmp.ne.s32.totalorder (!%p1213_p13), %s1208_s21, 0 }
  0x4f   : > { %174 = sbr.rel (%p1213_p13) target bundleno = 229 (0xe5), region = 28  ;;  %s631_s26 = sshll.u32 (!%p1213_p13), %s1055_s20, 8 }
  0x50   : > { %s177_s4 = scalar_lea.sflag (!%p1213_p13), [#allocation6], %s1055_s20  ;;  %s1059_s6 = scalar_lea.vmem (!%p1213_p13), [#allocation5], %s631_s26 }
  0x56   : > { %850 = dma.done.wait (%p1214_p8), %s177_s4, 4096  }
  0x57   : > { %852 = vsyncadd (%p1214_p8), %s177_s4, 4294963200  ;;  %s632_s5 = sshll.u32 %s1055_s20, 1  ;;  %s186_s15 = scalar_lea.sflag [#allocation9], %s1055_s20 }
  0x58   : > { %s1067_s19 = scalar_lea.vmem [#allocation8], %s632_s5 }
  0x59   : > { %854 = dma.done.wait (%p1214_p8), %s186_s15, 32  }
  0x5a   : > { %856 = vsyncadd (%p1214_p8), %s186_s15, 4294967264  ;;  %v216_v0 = vld [vmem:[%s1059_s6] sm:$0xff]  ;;  %v217_v1 = vld [vmem:[%s1059_s6 + $0x8] sm:$0xff]  ;;  %s633_s21 = sshll.u32 %s1055_s20, 6  ;;  %s659_s27 = sshll.u32 %s875_s12, 7 }
  0x5b   : > { %v218_v2 = vld [vmem:[%s1059_s6 + $0x10] sm:$0xff]  ;;  %v219_v3 = vld [vmem:[%s1059_s6 + $0x18] sm:$0xff]  ;;  %v220_v4 = vld [vmem:[%s1059_s6 + $0x20] sm:$0xff]  ;;  %v224_v8 = vmul.f32 %v216_v0, %v216_v0  ;;  %v225_v9 = vmul.f32 %v217_v1, %v217_v1  ;;  %s214_s30 = scalar_lea.vmem [#allocation10], %s633_s21  ;;  %s1151_s3 = scalar_lea.hbm %s1204_s2, %s659_s27 }
  0x5c   : > { %v221_v5 = vld [vmem:[%s1059_s6 + $0x28] sm:$0xff]  ;;  %v222_v6 = vld [vmem:[%s1059_s6 + $0x30] sm:$0xff]  ;;  %v223_v7 = vld [vmem:[%s1059_s6 + $0x38] sm:$0xff]  ;;  %v226_v11 = vmul.f32 %v218_v2, %v218_v2  ;;  %v227_v12 = vmul.f32 %v219_v3, %v219_v3  ;;  %v228_v13 = vmul.f32 %v220_v4, %v220_v4  ;;  %s514_s28 = sshll.u32 %s214_s30, 4  ;;  %s502_s7 = scalar_lea.sflag [#allocation7], %s1055_s20  ;;  %s1153_s28 = int_to_ptr.vmem [resolvable:$true] %s514_s28 }
  0x5d   : > { %v634_v10 = vld [vmem:[%s1059_s6 + $0x40] sm:$0xff]  ;;  %v229_v14 = vmul.f32 %v221_v5, %v221_v5  ;;  %v635_v15 = vld [vmem:[%s1059_s6 + $0x48] sm:$0xff]  ;;  %v636_v16 = vld [vmem:[%s1059_s6 + $0x50] sm:$0xff]  ;;  %v230_v18 = vmul.f32 %v222_v6, %v222_v6  ;;  %v231_v19 = vmul.f32 %v223_v7, %v223_v7  ;;  %s797_s25 = scalar_lea.vmem %s1153_s28, 1024  ;;  %p1215_p2 = scmp.ne.s32.totalorder %s1209_s22, 0 }
  0x5e   : > { %v637_v17 = vld [vmem:[%s1059_s6 + $0x58] sm:$0xff]  ;;  %v638_v20 = vld [vmem:[%s1059_s6 + $0x60] sm:$0xff]  ;;  %v639_v21 = vld [vmem:[%s1059_s6 + $0x68] sm:$0xff]  ;;  %v249_v23 = vmul.f32 %v634_v10, %v634_v10  ;;  %v250_v24 = vmul.f32 %v635_v15, %v635_v15  ;;  %v241_v26 = vadd.f32 %v634_v10, %v216_v0  ;;  %v242_v27 = vadd.f32 %v635_v15, %v217_v1  ;;  %p798_p0 = scmp.ne.s32.totalorder %s1153_s28, %s797_s25  ;;  %s890_s8 = smov [#allocation10]  }
  0x5f   : > { %v640_v22 = vld [vmem:[%s1059_s6 + $0x70] sm:$0xff]  ;;  %v641_v25 = vld [vmem:[%s1059_s6 + $0x78] sm:$0xff]  ;;  %v243_v28 = vadd.f32 %v636_v16, %v218_v2  ;;  %v251_v29 = vmul.f32 %v636_v16, %v636_v16  ;;  %v244_v30 = vadd.f32 %v637_v17, %v219_v3  ;;  %v252_v31 = vmul.f32 %v637_v17, %v637_v17  ;;  %v642_v38 = vld [vmem:[%s1059_s6 + $0x80] sm:$0xff]  ;;  %s801_s16 = sshll.u32 %s890_s8, 4  ;;  %s802_s16 = int_to_ptr.vmem [resolvable:$false] %s801_s16 }
  0x60   : > { %v253_v32 = vmul.f32 %v638_v20, %v638_v20  ;;  %v254_v33 = vmul.f32 %v639_v21, %v639_v21  ;;  %v245_v34 = vadd.f32 %v638_v20, %v220_v4  ;;  %v246_v35 = vadd.f32 %v639_v21, %v221_v5  ;;  %v643_v39 = vld [vmem:[%s1059_s6 + $0x88] sm:$0xff]  ;;  %v644_v44 = vld [vmem:[%s1059_s6 + $0x90] sm:$0xff]  ;;  %v645_v45 = vld [vmem:[%s1059_s6 + $0x98] sm:$0xff]  ;;  %p799_p11 = pnand %p798_p0, %p1215_p2  ;;  %s803_s18 = scalar_lea.vmem %s802_s16, 2048 }
  0x61   : > { %v255_v36 = vmul.f32 %v640_v22, %v640_v22  ;;  %v256_v37 = vmul.f32 %v641_v25, %v641_v25  ;;  %v247_v40 = vadd.f32 %v640_v22, %v222_v6  ;;  %v248_v41 = vadd.f32 %v641_v25, %v223_v7  ;;  %v646_v50 = vld [vmem:[%s1059_s6 + $0xa0] sm:$0xff]  ;;  %v647_v51 = vld [vmem:[%s1059_s6 + $0xa8] sm:$0xff]  ;;  %v648_v54 = vld [vmem:[%s1059_s6 + $0xb0] sm:$0xff]  ;;  %p804_p6 = scmp.lt.s32.totalorder %s1153_s28, %s802_s16  ;;  %p805_p7 = scmp.lt.s32.totalorder %s803_s18, %s797_s25 }
  0x62   : > { %v257_v42 = vadd.f32 %v249_v23, %v224_v8  ;;  %v258_v43 = vadd.f32 %v250_v24, %v225_v9  ;;  %v259_v46 = vadd.f32 %v251_v29, %v226_v11  ;;  %v260_v47 = vadd.f32 %v252_v31, %v227_v12  ;;  %v649_v55 = vld [vmem:[%s1059_s6 + $0xb8] sm:$0xff]  ;;  %v650_v6 = vld [vmem:[%s1059_s6 + $0xc0] sm:$0xff]  ;;  %v651_v7 = vld [vmem:[%s1059_s6 + $0xc8] sm:$0xff]  ;;  %p800_p4 = pneg %p799_p11 }
  0x63   : > { %v261_v48 = vadd.f32 %v253_v32, %v228_v13  ;;  %v262_v49 = vadd.f32 %v254_v33, %v229_v14  ;;  %v263_v52 = vadd.f32 %v255_v36, %v230_v18  ;;  %v264_v53 = vadd.f32 %v256_v37, %v231_v19  ;;  %v652_v12 = vld [vmem:[%s1059_s6 + $0xd0] sm:$0xff]  ;;  %v653_v13 = vld [vmem:[%s1059_s6 + $0xd8] sm:$0xff]  ;;  %v654_v18 = vld [vmem:[%s1059_s6 + $0xe0] sm:$0xff]  ;;  %p806_p12 = por %p805_p7, %p804_p6 }
  0x64   : > { %v274_v56 = vadd.f32 %v642_v38, %v241_v26  ;;  %v275_v57 = vadd.f32 %v643_v39, %v242_v27  ;;  %v276_v58 = vadd.f32 %v644_v44, %v243_v28  ;;  %v277_v59 = vadd.f32 %v645_v45, %v244_v30  ;;  %v655_v21 = vld [vmem:[%s1059_s6 + $0xe8] sm:$0xff]  ;;  %v656_v24 = vld [vmem:[%s1059_s6 + $0xf0] sm:$0xff]  ;;  %v657_v29 = vld [vmem:[%s1059_s6 + $0xf8] sm:$0xff] }
  0x65   : > { %v282_v60 = vmul.f32 %v642_v38, %v642_v38  ;;  %v283_v61 = vmul.f32 %v643_v39, %v643_v39  ;;  %v284_v62 = vmul.f32 %v644_v44, %v644_v44  ;;  %v285_v63 = vmul.f32 %v645_v45, %v645_v45  ;;  %p807_p9 = pnand %p806_p12, %p800_p4 }
  0x66   : > { %v286_v0 = vmul.f32 %v646_v50, %v646_v50  ;;  %v287_v1 = vmul.f32 %v647_v51, %v647_v51  ;;  %v278_v2 = vadd.f32 %v646_v50, %v245_v34  ;;  %v279_v3 = vadd.f32 %v647_v51, %v246_v35 }
  0x67   : > { %v288_v4 = vmul.f32 %v648_v54, %v648_v54  ;;  %v289_v5 = vmul.f32 %v649_v55, %v649_v55  ;;  %v280_v8 = vadd.f32 %v648_v54, %v247_v40  ;;  %v281_v9 = vadd.f32 %v649_v55, %v248_v41 }
  0x68   : > { %v290_v10 = vadd.f32 %v282_v60, %v257_v42  ;;  %v291_v11 = vadd.f32 %v283_v61, %v258_v43  ;;  %v292_v14 = vadd.f32 %v284_v62, %v259_v46  ;;  %v293_v15 = vadd.f32 %v285_v63, %v260_v47 }
  0x69   : > { %v294_v16 = vadd.f32 %v286_v0, %v261_v48  ;;  %v295_v17 = vadd.f32 %v287_v1, %v262_v49  ;;  %v296_v19 = vadd.f32 %v288_v4, %v263_v52  ;;  %v297_v20 = vadd.f32 %v289_v5, %v264_v53 }
  0x6a   : > { %v307_v22 = vadd.f32 %v650_v6, %v274_v56  ;;  %v308_v23 = vadd.f32 %v651_v7, %v275_v57  ;;  %v309_v25 = vadd.f32 %v652_v12, %v276_v58  ;;  %v310_v26 = vadd.f32 %v653_v13, %v277_v59 }
  0x6b   : > { %v315_v27 = vmul.f32 %v650_v6, %v650_v6  ;;  %v316_v28 = vmul.f32 %v651_v7, %v651_v7  ;;  %v311_v30 = vadd.f32 %v654_v18, %v278_v2  ;;  %v317_v31 = vmul.f32 %v652_v12, %v652_v12 }
  0x6c   : > { %v318_v32 = vmul.f32 %v653_v13, %v653_v13  ;;  %v319_v33 = vmul.f32 %v654_v18, %v654_v18  ;;  %v312_v34 = vadd.f32 %v655_v21, %v279_v3  ;;  %v320_v35 = vmul.f32 %v655_v21, %v655_v21 }
  0x6d   : > { %v323_v36 = vadd.f32 %v315_v27, %v290_v10  ;;  %v324_v37 = vadd.f32 %v316_v28, %v291_v11  ;;  %v313_v38 = vadd.f32 %v656_v24, %v280_v8  ;;  %v321_v39 = vmul.f32 %v656_v24, %v656_v24 }
  0x6e   : > { %v325_v40 = vadd.f32 %v317_v31, %v292_v14  ;;  %v326_v41 = vadd.f32 %v318_v32, %v293_v15  ;;  %v314_v42 = vadd.f32 %v657_v29, %v281_v9  ;;  %v327_v43 = vadd.f32 %v319_v33, %v294_v16 }
  0x6f   : > { %v331_v44 = vmul.f32 %v307_v22, %v307_v22  ;;  %v332_v45 = vmul.f32 %v308_v23, %v308_v23  ;;  %v322_v46 = vmul.f32 %v657_v29, %v657_v29  ;;  %v333_v47 = vmul.f32 %v309_v25, %v309_v25 }
  0x70   : > { %v334_v48 = vmul.f32 %v310_v26, %v310_v26  ;;  %v335_v49 = vmul.f32 %v311_v30, %v311_v30  ;;  %v328_v50 = vadd.f32 %v320_v35, %v295_v17  ;;  %v336_v51 = vmul.f32 %v312_v34, %v312_v34 }
  0x71   : > { %v339_v52 = vsub.f32 %v331_v44, %v323_v36  ;;  %v340_v53 = vsub.f32 %v332_v45, %v324_v37  ;;  %v329_v54 = vadd.f32 %v321_v39, %v296_v19  ;;  %v341_v55 = vsub.f32 %v333_v47, %v325_v40 }
  0x72   : > { %v342_v56 = vsub.f32 %v334_v48, %v326_v41  ;;  %v337_v57 = vmul.f32 %v313_v38, %v313_v38  ;;  %v343_v58 = vsub.f32 %v335_v49, %v327_v43  ;;  %v330_v61 = vadd.f32 %v322_v46, %v297_v20 }
  0x73   : > { %v1105_v59 = vmul.f32 0.5, %v339_v52  ;;  %v1107_v60 = vmul.f32 0.5, %v340_v53  ;;  %v1109_v62 = vmul.f32 0.5, %v341_v55  ;;  %v338_v63 = vmul.f32 %v314_v42, %v314_v42 }
  0x74   : > { %v344_v0 = vsub.f32 %v336_v51, %v328_v50  ;;  %v1111_v1 = vmul.f32 0.5, %v342_v56  ;;  %v345_v3 = vsub.f32 %v337_v57, %v329_v54  ;;  %v1115_v4 = vmul.f32 0.5, %v343_v58  ;;  %v450_v56 = vld [vmem:[%s1067_s19] sm:$0x3] }
  0x75   : > { %v365_v2 = vadd.f32 %v1107_v60, %v1105_v59  ;;  %v346_v6 = vsub.f32 %v338_v63, %v330_v61  ;;  %v455_v54 = vlaneseq }
  0x76   : > { %v1118_v7 = vmul.f32 0.5, %v344_v0  ;;  %v1121_v9 = vmul.f32 0.5, %v345_v3 }
  0x77   : > { %v366_v5 = vadd.f32 %v365_v2, %v1109_v62  ;;  %v1124_v11 = vmul.f32 0.5, %v346_v6  ;;  %v456_v55 = vshrl.u32 %v455_v54, 7 }
  0x79   : > { %v367_v8 = vadd.f32 %v366_v5, %v1111_v1  ;;  %v457_v61 = vsub.s32 0, %v456_v55  ;;  %v483_v5 = vsub.s32 1, %v456_v55 }
  0x7b   : > { %v368_v10 = vadd.f32 %v367_v8, %v1115_v4 }
  0x7d   : > { %v369_v12 = vadd.f32 %v368_v10, %v1118_v7 }
  0x7f   : > { %v370_v13 = vadd.f32 %v369_v12, %v1121_v9 }
  0x81   : > { %v371_v14 = vadd.f32 %v370_v13, %v1124_v11 }
  0x83   : > { %v372_v15 = vrot.slane %v371_v14, 4 }
  0x85   : > { %v373_v16 = vadd.f32 %v372_v15, %v371_v14 }
  0x87   : > { %v374_v17 = vrot.slane %v373_v16, 2 }
  0x89   : > { %v375_v18 = vadd.f32 %v374_v17, %v373_v16 }
  0x8b   : > { %v376_v19 = vrot.slane %v375_v18, 1 }
  0x8d   : > { %v377_v20 = vadd.f32 %v376_v19, %v375_v18 }
  0x8f   : > { %v379_v21 = vmul.f32 0.015625, %v377_v20 }
  0x91   : > { %v380_v22 = vsub.f32 %v1105_v59, %v379_v21  ;;  %v381_v23 = vsub.f32 %v1107_v60, %v379_v21  ;;  %v382_v24 = vsub.f32 %v1109_v62, %v379_v21  ;;  %v383_v25 = vsub.f32 %v1111_v1, %v379_v21  ;;  %413 = vst [vmem:[#allocation3] sm:$0x1] %v379_v21 }
  0x92   : > { %v384_v26 = vsub.f32 %v1115_v4, %v379_v21  ;;  %v385_v30 = vsub.f32 %v1118_v7, %v379_v21  ;;  %v386_v33 = vsub.f32 %v1121_v9, %v379_v21  ;;  %v387_v36 = vsub.f32 %v1124_v11, %v379_v21 }
  0x93   : > { %v388_v27 = vmul.f32 %v380_v22, %v380_v22  ;;  %v389_v28 = vmul.f32 %v381_v23, %v381_v23  ;;  %v390_v29 = vmul.f32 %v382_v24, %v382_v24  ;;  %v391_v31 = vmul.f32 %v383_v25, %v383_v25 }
  0x94   : > { %v392_v34 = vmul.f32 %v384_v26, %v384_v26  ;;  %v393_v37 = vmul.f32 %v385_v30, %v385_v30  ;;  %v394_v39 = vmul.f32 %v386_v33, %v386_v33  ;;  %v395_v41 = vmul.f32 %v387_v36, %v387_v36 }
  0x95   : > { %v396_v32 = vadd.f32 %v389_v28, %v388_v27 }
  0x97   : > { %v397_v35 = vadd.f32 %v396_v32, %v390_v29 }
  0x98   : > { %v452_v58 = vld [vmem:[#allocation3] sm:$0x1] }
  0x99   : > { %v398_v38 = vadd.f32 %v397_v35, %v391_v31 }
  0x9b   : > { %v399_v40 = vadd.f32 %v398_v38, %v392_v34 }
  0x9d   : > { %v400_v42 = vadd.f32 %v399_v40, %v393_v37 }
  0x9f   : > { %v401_v43 = vadd.f32 %v400_v42, %v394_v39 }
  0xa1   : > { %v402_v44 = vadd.f32 %v401_v43, %v395_v41 }
  0xa3   : > { %v403_v45 = vrot.slane %v402_v44, 4 }
  0xa5   : > { %v404_v46 = vadd.f32 %v403_v45, %v402_v44 }
  0xa7   : > { %v405_v47 = vrot.slane %v404_v46, 2 }
  0xa9   : > { %v406_v48 = vadd.f32 %v405_v47, %v404_v46 }
  0xab   : > { %v407_v49 = vrot.slane %v406_v48, 1 }
  0xad   : > { %v408_v50 = vadd.f32 %v407_v49, %v406_v48 }
  0xaf   : > { %414 = vst [vmem:[#allocation4] sm:$0x1] %v408_v50 }
  0xb6   : > { %v446_v51 = vld [vmem:[#allocation4] sm:$0x1] }
  0xb7   : > { %v447_v52 = vmul.f32 0.015625, %v446_v51 }
  0xb9   : > { %v448_v53 = vadd.f32 1e-05, %v447_v52 }
  0xbb   : > { %735 = vrsqrt.f32 %v448_v53 }
  0xc5   : > { %v736_v57 = vpop.eup %735 }
  0xc6   : > { %v451_v63 = vmul.f32 %v736_v57, %v450_v56 }
  0xc8   : > { %v453_v0 = vmul.f32 %v452_v58, %v451_v63  ;;  %v472_v2 = vrot.slane %v451_v63, %v457_v61 }
  0xca   : > { %v458_v3 = vrot.slane %v453_v0, %v457_v61  ;;  %v473_v8 = vmul.f32 %v472_v2, %v1105_v59  ;;  %v474_v12 = vmul.f32 %v472_v2, %v1107_v60  ;;  %v475_v13 = vmul.f32 %v472_v2, %v1109_v62 }
  0xcb   : > { %v476_v14 = vmul.f32 %v472_v2, %v1111_v1  ;;  %v477_v15 = vmul.f32 %v472_v2, %v1115_v4  ;;  %v478_v16 = vmul.f32 %v472_v2, %v1118_v7  ;;  %v479_v17 = vmul.f32 %v472_v2, %v1121_v9 }
  0xcc   : > { %v460_v6 = vsub.f32 %v450_v56, %v458_v3  ;;  %v480_v18 = vmul.f32 %v472_v2, %v1124_v11 }
  0xce   : > { %v484_v10 = vrot.slane %v460_v6, %v483_v5 }
  0xd0   : > { %v485_v59 = vadd.f32 %v484_v10, %v473_v8  ;;  %v486_v60 = vadd.f32 %v484_v10, %v474_v12  ;;  %v487_v62 = vadd.f32 %v484_v10, %v475_v13  ;;  %v488_v1 = vadd.f32 %v484_v10, %v476_v14 }
  0xd1   : > { %v489_v4 = vadd.f32 %v484_v10, %v477_v15  ;;  %v490_v7 = vadd.f32 %v484_v10, %v478_v16  ;;  %v491_v9 = vadd.f32 %v484_v10, %v479_v17  ;;  %v492_v19 = vadd.f32 %v484_v10, %v480_v18 }
  0xd2   : > { %493 = vst [vmem:[%s214_s30] sm:$0xff] %v485_v59  ;;  %494 = vst [vmem:[%s214_s30 + $0x8] sm:$0xff] %v486_v60 }
  0xd3   : > { %495 = vst [vmem:[%s214_s30 + $0x10] sm:$0xff] %v487_v62  ;;  %496 = vst [vmem:[%s214_s30 + $0x18] sm:$0xff] %v488_v1 }
  0xd4   : > { %497 = vst [vmem:[%s214_s30 + $0x20] sm:$0xff] %v489_v4  ;;  %498 = vst [vmem:[%s214_s30 + $0x28] sm:$0xff] %v490_v7 }
  0xd5   : > { %499 = vst [vmem:[%s214_s30 + $0x30] sm:$0xff] %v491_v9  ;;  %500 = vst [vmem:[%s214_s30 + $0x38] sm:$0xff] %v492_v19 }
  0xd6   : > { %810 = shalt.err (!%p807_p9)
}
  0xd7   : > { %s811_s26 = scalar_lea.hbm %s1151_s3, 1024  ;;  %s815_s5 = scalar_lea.hbm %s1204_s2, 2048 }
  0xd8   : > { %p812_p5 = scmp.ne.s32.totalorder %s1151_s3, %s811_s26  ;;  %p816_p3 = scmp.lt.u32.totalorder %s1151_s3, %s1204_s2 }
  0xd9   : > { %p817_p13 = scmp.lt.u32.totalorder %s815_s5, %s811_s26  ;;  %p819_p0 = scmp.lt.u32.totalorder %s811_s26, %s1151_s3 }
  0xda   : > { %p813_p10 = pnand %p812_p5, %p1215_p2 }
  0xdb   : > { %p818_p8 = por %p817_p13, %p816_p3 }
  0xdc   : > { %p814_p1 = pneg %p813_p10 }
  0xdd   : > { %p820_p11 = por %p819_p0, %p818_p8 }
  0xdf   : > { %p821_p4 = pnand %p820_p11, %p814_p1 }
  0xe1   : > { %824 = shalt.err (!%p821_p4)
}
  0xe2   : > { %s891_s21 = smov 128   ;;  %s892_s27 = smov 256  }
  0xe3   : > { %s893_s30 = smov 8  }
  0xe4   : > { %666 = dma.vmem_to_hbm [thread:$0]  (%p1215_p2), %s1153_s28, 1024, %s1151_s3, %s502_s7, %s891_s21, %s892_s27, %s893_s30  }
  0xe5 PF: > { %s529_s12 = sand.u32 1, %s863_s9   ;;  %p1216_p6 = scmp.ne.s32.totalorder %s1210_s24, 0 }
  0xe6   : > { %p1217_p7 = scmp.ge.s32.totalorder %s883_s14, 2  ;;  %s530_s29 = scalar_lea.sflag [#allocation7], %s529_s12 }
  0xe8   : > { %p676_p12 = pnand %p1217_p7, %p1216_p6 }
  0xea   : > { %858 = dma.done.wait (!%p676_p12), %s530_s29, 1024  }
  0xeb   : > { %860 = vsyncadd (!%p676_p12), %s530_s29, 4294966272  ;;  %s21_s14 = sadd.s32 1, %s883_s14   ;;  %s1218_s9 = smov %s867_s10 }
  0xec   : > { %p18_p9 = scmp.ge.s32.totalorder %s21_s14, 4   ;;  %s1219_s10 = smov %s871_s11 }
  0xed   : > { %s1220_s11 = smov %s965_s23  ;;  %s1221_s12 = smov %s879_s13 }
  0xee   : > { %s1222_s13 = smov %s1224_s17  ;;  %20 = sbr.rel (!%p18_p9) target bundleno = 8 (0x8), region = 102 }
  0xf5   :  { %535 = vsyncpa [#allocation6], 1 }
  0xf6   :  { %537 = vsyncpa [#allocation6 + $0x1], 1 }
  0xf7   :  { %538 = vsyncpa [#allocation9], 1 }
  0xf8   :  { %540 = vsyncpa [#allocation9 + $0x1], 1 }
  0xf9   :  { %541 = vsyncpa [#allocation7], 1 }
  0xfa   :  { %543 = vsyncpa [#allocation7 + $0x1], 1 }

</bundles_post_ra>
